<compile_context>
chip_gen: v7x
topology: tpu7x:2x2x1
jax: 0.10.0
libtpu: 0.0.40
codegen_flags: <defaults>
</compile_context>

<pallas_src>
import jax
import jax.numpy as jnp
from jax.experimental import pallas as pl
from jax.experimental.pallas import tpu as pltpu


def _round_up(x, m):
    return ((x + m - 1) // m) * m


def _vmem_capacity_bytes():
    """Per-TensorCore VMEM capacity; conservative fallback if query fails."""
    try:
        return int(pltpu.get_tpu_info().vmem_capacity_bytes)
    except Exception:
        return 64 * 1024 * 1024          # v7x-sized fallback: safe everywhere


def _make_multi_ce_kernel(k_outs, tn, n_valid):
    """Kernel over one batch tile, summing CE over all K outputs.

    refs = (logits_0 (TN,C0), ..., logits_{K-1} (TN,C_{K-1}),
            target (TN,1) int32, out (8,128) f32)
    Writes the tile's un-normalized CE sum (scalar splat) to its (8,128) block.
    """

    def kernel(*refs):
        logit_refs = refs[:k_outs]
        tgt_ref = refs[k_outs]
        out_ref = refs[k_outs + 1]

        tile = pl.program_id(0)
        # Global row index of each row in this tile; rows >= n_valid are either
        # padding (targets) or un-DMA'd garbage from a partial last block
        # (logits) and are masked out below.
        row = jax.lax.broadcasted_iota(jnp.int32, (tn, 1), 0) + tile * tn
        row_mask = row < n_valid
        tgt = tgt_ref[...]                                     # (TN, 1) int32

        # One (TN, C) one-hot mask per distinct class count, shared across all
        # outputs with that C (hoists the iota + compare out of the K loop).
        onehot_by_c = {}
        total = jnp.float32(0.0)
        for lref in logit_refs:
            c = lref.shape[-1]
            if c not in onehot_by_c:
                col = jax.lax.broadcasted_iota(jnp.int32, (tn, c), 1)
                onehot_by_c[c] = col == tgt
            onehot = onehot_by_c[c]

            logits = lref[...].astype(jnp.float32)             # (TN, C_k)
            # Numerically-stable log-sum-exp per row (full class axis in-block).
            m = jnp.max(logits, axis=-1, keepdims=True)
            lse = jnp.log(jnp.sum(jnp.exp(logits - m), axis=-1, keepdims=True)) + m
            # Gather the target logit via the hoisted one-hot mask (no dynamic
            # gather on TPU).  Out-of-range targets silently gather 0.
            tgt_logit = jnp.sum(jnp.where(onehot, logits, 0.0),
                                axis=-1, keepdims=True)        # (TN, 1)
            per_row = jnp.where(row_mask, lse - tgt_logit, 0.0)
            total = total + jnp.sum(per_row)

        # Scalar splat (cheap vreg fill, not an XLU broadcast); distinct block
        # per grid step keeps the "parallel" axis megacore-safe.
        out_ref[...] = jnp.full(out_ref.shape, total, dtype=out_ref.dtype)

    return kernel


def multi_output_sum_loss(outputs, target):
    """MultiOutputSumLoss(CrossEntropyLoss()) forward.

    outputs: a single (N, C) array or a list of (N, C_k) arrays (f32 or bf16).
    target:  (N,) integer class indices (shared across outputs).
    Returns: scalar float32 loss = sum_k mean_i CE(outputs[k][i], target[i]).
    """
    if not isinstance(outputs, (list, tuple)):
        outputs = [outputs]                     # torch.is_tensor(output) branch
    outputs = list(outputs)
    k_outs = len(outputs)
    n = int(outputs[0].shape[0])
    for o in outputs:
        assert int(o.shape[0]) == n, "all outputs must share the batch dimension"

    # --- Generation-aware VMEM sizing --------------------------------------
    cap = _vmem_capacity_bytes()                       # 128 MiB v5e/v6e, 64 MiB v7x
    vmem_limit = min(cap // 2, 64 * 1024 * 1024)       # 64 MiB v5e/v6e, 32 MiB v7x
    budget = vmem_limit // 2                           # headroom for compiler temps

    # Per batch row: DMA'd bytes (double-buffered) + in-kernel f32 working set
    # (f32 upcast of the logits plus ~one temp for exp / one-hot / where).
    dma_row = 128 * 4                                  # int32 target, lane-padded
    work_row = 0
    for o in outputs:
        c_pad = _round_up(int(o.shape[1]), 128)
        dma_row += c_pad * o.dtype.itemsize
        work_row += 2 * c_pad * 4

    tn = budget // (2 * dma_row + work_row)
    tn = max(8, min((tn // 8) * 8, max(8, (n // 8) * 8)))
    num_tiles = (n + tn - 1) // tn
    n_pad = num_tiles * tn

    tgt = target.astype(jnp.int32).reshape(n, 1)
    if n_pad != n:
        # Only the tiny (N,1) int32 target is padded (belt-and-suspenders for
        # the masked rows); logits are left unpadded and the last partial
        # block's garbage rows are masked in-kernel by row_mask.
        tgt = jnp.pad(tgt, ((0, n_pad - n), (0, 0)))
    if tn > n:
        # Tiny-batch corner case (n < 8): the block would exceed the array, so
        # pad the (small) logits too.  Negligible cost at this size.
        outputs = [jnp.pad(o, ((0, tn - int(o.shape[0])), (0, 0))) for o in outputs]

    in_specs = [pl.BlockSpec((tn, int(o.shape[1])), lambda i: (i, 0)) for o in outputs]
    in_specs.append(pl.BlockSpec((tn, 1), lambda i: (i, 0)))       # targets

    partials = pl.pallas_call(
        _make_multi_ce_kernel(k_outs, tn, n),
        out_shape=jax.ShapeDtypeStruct((num_tiles * 8, 128), jnp.float32),
        grid=(num_tiles,),
        in_specs=in_specs,
        out_specs=pl.BlockSpec((8, 128), lambda i: (i, 0)),        # per-tile partials
        compiler_params=pltpu.CompilerParams(
            dimension_semantics=("parallel",),    # batch tiles are independent
            vmem_limit_bytes=vmem_limit,
        ),
    )(*outputs, tgt)

    # Each tile wrote one partial sum over its (8, 128) block: pick one
    # representative per tile, reduce, and apply the single global 1/N scale.
    per_tile = partials[::8, 0]
    return jnp.sum(per_tile) * (1.0 / n)


def _reference(outputs, target):
    """Pure-JAX reference: sum of mean cross-entropies."""
    if not isinstance(outputs, (list, tuple)):
        outputs = [outputs]
    total = jnp.float32(0.0)
    for logits in outputs:
        logits = logits.astype(jnp.float32)
        logp = jax.nn.log_softmax(logits, axis=-1)
        nll = -jnp.take_along_axis(logp, target[:, None].astype(jnp.int32),
                                   axis=-1)[:, 0]
        total = total + jnp.mean(nll)
    return total


if __name__ == "__main__":
    key = jax.random.PRNGKey(0)
    k1, k2, k3, k4, k5 = jax.random.split(key, 5)

    # list-of-outputs case (two heads), aligned small shapes
    N, C = 8, 32
    out1 = jax.random.normal(k1, (N, C), dtype=jnp.float32)
    out2 = jax.random.normal(k2, (N, C), dtype=jnp.float32)
    target = jax.random.randint(k3, (N,), 0, C, dtype=jnp.int32)

    loss = multi_output_sum_loss([out1, out2], target)
    jax.block_until_ready(loss)
    ref = _reference([out1, out2], target)
    assert jnp.allclose(loss, ref, rtol=1e-5, atol=1e-5), (loss, ref)

    # single-tensor case (torch.is_tensor(output) branch)
    loss_single = multi_output_sum_loss(out1, target)
    jax.block_until_ready(loss_single)
    assert jnp.allclose(loss_single, _reference(out1, target),
                        rtol=1e-5, atol=1e-5)

    # unaligned shapes: N not a multiple of 8/tile (exercises the unpadded
    # partial-last-block + row-mask path, 2 grid tiles), C not a multiple of
    # 128, bf16 logits kept in bf16 in HBM
    N2, C2 = 20, 10
    out3 = jax.random.normal(k4, (N2, C2)).astype(jnp.bfloat16)
    target2 = jax.random.randint(k5, (N2,), 0, C2, dtype=jnp.int32)
    loss3 = multi_output_sum_loss(out3, target2)
    jax.block_until_ready(loss3)
    assert jnp.allclose(loss3, _reference(out3, target2),
                        rtol=1e-5, atol=1e-5), (loss3, _reference(out3, target2))

    print("KERNEL_OK")
</pallas_src>

<mosaic_0001>
module attributes {stable_mosaic.version = 11 : i64} {
  func.func @kernel(%arg0: i32, %arg1: memref<8x32xf32, #tpu.memory_space<vmem>>, %arg2: memref<8x32xf32, #tpu.memory_space<vmem>>, %arg3: memref<8x1xi32, #tpu.memory_space<vmem>>, %arg4: memref<8x128xf32, #tpu.memory_space<vmem>>) attributes {dimension_semantics = [#tpu.dimension_semantics<parallel>], iteration_bounds = array<i64: 1>, scalar_prefetch = 0 : i64, scratch_operands = 0 : i64, tpu.core_type = #tpu.core_type<tc>, window_params = [{transform_indices = @transform_0, window_bounds = array<i64: 8, 32>}, {transform_indices = @transform_1, window_bounds = array<i64: 8, 32>}, {transform_indices = @transform_2, window_bounds = array<i64: 8, 1>}, {transform_indices = @transform_3, window_bounds = array<i64: 8, 128>}]} {
    %0 = tpu.iota {dimensions = array<i32: 0>} : vector<8x1xi32>
    %c8_i32 = arith.constant 8 : i32
    %1 = arith.muli %arg0, %c8_i32 : i32
    %2 = vector.broadcast %1 : i32 to vector<8x1xi32>
    %3 = arith.addi %0, %2 : vector<8x1xi32>
    %c8_i32_0 = arith.constant 8 : i32
    %4 = vector.broadcast %c8_i32_0 : i32 to vector<8x1xi32>
    %5 = arith.cmpi slt, %3, %4 : vector<8x1xi32>
    %c0 = arith.constant 0 : index
    %c0_1 = arith.constant 0 : index
    %6 = vector.load %arg3[%c0, %c0_1] : memref<8x1xi32, #tpu.memory_space<vmem>>, vector<8x1xi32>
    %7 = tpu.iota {dimensions = array<i32: 1>} : vector<8x32xi32>
    %8 = vector.broadcast %6 : vector<8x1xi32> to vector<8x32xi32>
    %9 = arith.cmpi eq, %7, %8 : vector<8x32xi32>
    %c0_2 = arith.constant 0 : index
    %c0_3 = arith.constant 0 : index
    %10 = vector.load %arg1[%c0_2, %c0_3] : memref<8x32xf32, #tpu.memory_space<vmem>>, vector<8x32xf32>
    %cst = arith.constant dense<0xFF800000> : vector<8xf32>
    %11 = vector.multi_reduction <maximumf>, %10, %cst [1] : vector<8x32xf32> to vector<8xf32>
    %12 = vector.shape_cast %11 : vector<8xf32> to vector<8x1xf32>
    %13 = vector.broadcast %12 : vector<8x1xf32> to vector<8x32xf32>
    %14 = arith.subf %10, %13 : vector<8x32xf32>
    %15 = math.exp %14 : vector<8x32xf32>
    %cst_4 = arith.constant dense<0.000000e+00> : vector<8xf32>
    %16 = vector.multi_reduction <add>, %15, %cst_4 [1] : vector<8x32xf32> to vector<8xf32>
    %17 = vector.shape_cast %16 : vector<8xf32> to vector<8x1xf32>
    %18 = math.log %17 : vector<8x1xf32>
    %19 = arith.addf %18, %12 : vector<8x1xf32>
    %cst_5 = arith.constant 0.000000e+00 : f32
    %20 = vector.broadcast %cst_5 : f32 to vector<8x32xf32>
    %21 = arith.select %9, %10, %20 : vector<8x32xi1>, vector<8x32xf32>
    %cst_6 = arith.constant dense<0.000000e+00> : vector<8xf32>
    %22 = vector.multi_reduction <add>, %21, %cst_6 [1] : vector<8x32xf32> to vector<8xf32>
    %23 = vector.shape_cast %22 : vector<8xf32> to vector<8x1xf32>
    %24 = arith.subf %19, %23 : vector<8x1xf32>
    %cst_7 = arith.constant 0.000000e+00 : f32
    %25 = vector.broadcast %cst_7 : f32 to vector<8x1xf32>
    %26 = arith.select %5, %24, %25 : vector<8x1xi1>, vector<8x1xf32>
    %27 = vector.shape_cast %26 : vector<8x1xf32> to vector<1x8x1xf32>
    %cst_8 = arith.constant dense<0.000000e+00> : vector<1xf32>
    %28 = vector.multi_reduction <add>, %27, %cst_8 [1, 2] : vector<1x8x1xf32> to vector<1xf32>
    %29 = vector.shape_cast %28 : vector<1xf32> to vector<1x1x1xf32>
    %30 = vector.extract %29[0, 0, 0] : f32 from vector<1x1x1xf32>
    %cst_9 = arith.constant 0.000000e+00 : f32
    %31 = arith.addf %cst_9, %30 : f32
    %c0_10 = arith.constant 0 : index
    %c0_11 = arith.constant 0 : index
    %32 = vector.load %arg2[%c0_10, %c0_11] : memref<8x32xf32, #tpu.memory_space<vmem>>, vector<8x32xf32>
    %cst_12 = arith.constant dense<0xFF800000> : vector<8xf32>
    %33 = vector.multi_reduction <maximumf>, %32, %cst_12 [1] : vector<8x32xf32> to vector<8xf32>
    %34 = vector.shape_cast %33 : vector<8xf32> to vector<8x1xf32>
    %35 = vector.broadcast %34 : vector<8x1xf32> to vector<8x32xf32>
    %36 = arith.subf %32, %35 : vector<8x32xf32>
    %37 = math.exp %36 : vector<8x32xf32>
    %cst_13 = arith.constant dense<0.000000e+00> : vector<8xf32>
    %38 = vector.multi_reduction <add>, %37, %cst_13 [1] : vector<8x32xf32> to vector<8xf32>
    %39 = vector.shape_cast %38 : vector<8xf32> to vector<8x1xf32>
    %40 = math.log %39 : vector<8x1xf32>
    %41 = arith.addf %40, %34 : vector<8x1xf32>
    %cst_14 = arith.constant 0.000000e+00 : f32
    %42 = vector.broadcast %cst_14 : f32 to vector<8x32xf32>
    %43 = arith.select %9, %32, %42 : vector<8x32xi1>, vector<8x32xf32>
    %cst_15 = arith.constant dense<0.000000e+00> : vector<8xf32>
    %44 = vector.multi_reduction <add>, %43, %cst_15 [1] : vector<8x32xf32> to vector<8xf32>
    %45 = vector.shape_cast %44 : vector<8xf32> to vector<8x1xf32>
    %46 = arith.subf %41, %45 : vector<8x1xf32>
    %cst_16 = arith.constant 0.000000e+00 : f32
    %47 = vector.broadcast %cst_16 : f32 to vector<8x1xf32>
    %48 = arith.select %5, %46, %47 : vector<8x1xi1>, vector<8x1xf32>
    %49 = vector.shape_cast %48 : vector<8x1xf32> to vector<1x8x1xf32>
    %cst_17 = arith.constant dense<0.000000e+00> : vector<1xf32>
    %50 = vector.multi_reduction <add>, %49, %cst_17 [1, 2] : vector<1x8x1xf32> to vector<1xf32>
    %51 = vector.shape_cast %50 : vector<1xf32> to vector<1x1x1xf32>
    %52 = vector.extract %51[0, 0, 0] : f32 from vector<1x1x1xf32>
    %53 = arith.addf %31, %52 : f32
    %54 = vector.broadcast %53 : f32 to vector<8x128xf32>
    %c0_18 = arith.constant 0 : index
    %c0_19 = arith.constant 0 : index
    %55 = vector.load %arg4[%c0_18, %c0_19] : memref<8x128xf32, #tpu.memory_space<vmem>>, vector<8x128xf32>
    tpu.vector_store %arg4[%c0_18, %c0_19], %54 {strides = array<i32>} : memref<8x128xf32, #tpu.memory_space<vmem>>, vector<8x128xf32>,
    return
  }
  func.func @transform_0(%arg0: i32) -> (i32, i32) {
    %c0_i32 = arith.constant 0 : i32
    %c0_i32_0 = arith.constant 0 : i32
    return %arg0, %c0_i32 : i32, i32
  }
  func.func @transform_1(%arg0: i32) -> (i32, i32) {
    %c0_i32 = arith.constant 0 : i32
    %c0_i32_0 = arith.constant 0 : i32
    return %arg0, %c0_i32 : i32, i32
  }
  func.func @transform_2(%arg0: i32) -> (i32, i32) {
    %c0_i32 = arith.constant 0 : i32
    %c0_i32_0 = arith.constant 0 : i32
    return %arg0, %c0_i32 : i32, i32
  }
  func.func @transform_3(%arg0: i32) -> (i32, i32) {
    %c0_i32 = arith.constant 0 : i32
    %c0_i32_0 = arith.constant 0 : i32
    return %arg0, %c0_i32 : i32, i32
  }
}

</mosaic_0001>

<bundles_post_ra>
// kernel: tpu_custom_call.1
= control target key start
LH: loop header
LB: loop body
LE: loop exit
PB: predicated region body
PF: predicated region fallthrough
CT: control target
= control target key end

     0   :  { %8 = vsyncpa [#allocation3], 0  ;;  %s243_s0 = inlined_call_operand.vmem [shape: f32[8,32], index: 0, kind: input, shape index: {}]   ;;  %s244_s1 = inlined_call_operand.hbm [shape: f32[8,32], index: 1, kind: input, shape index: {}]   ;;  %s245_s2 = inlined_call_operand.vmem [shape: s32[8,1], index: 2, kind: input, shape index: {}]   ;;  %s246_s3 = inlined_call_operand.hbm [shape: f32[8,128], index: 3, kind: output, shape index: {}]  }
   0x1   :  { %9 = vsyncpa [#allocation4], 0  ;;  %s184_s12 = smov [#allocation2]   ;;  %s136_s16 = scalar_lea.hbm %s244_s1, 128 }
   0x2   :  { %s18_s13 = sshll.u32 %s184_s12, 4  ;;  %p137_p0 = scmp.ne.s32.totalorder %s244_s1, %s136_s16  ;;  %s19_s13 = int_to_ptr.vmem [resolvable:$true] %s18_s13 }
   0x3   :  { %p140_p1 = scmp.lt.u32.totalorder %s136_s16, %s244_s1 }
   0x5   :  { %p142_p2 = pnand %p140_p1, %p137_p0 }
   0x7   :  { %145 = shalt.err (!%p142_p2)
}
   0x8   :  { %s146_s21 = scalar_lea.vmem %s19_s13, 128  ;;  %p151_p4 = scmp.lt.s32.totalorder %s19_s13, %s19_s13 }
   0x9   :  { %p147_p3 = scmp.ne.s32.totalorder %s19_s13, %s146_s21  ;;  %p152_p5 = scmp.lt.s32.totalorder %s146_s21, %s146_s21 }
   0xb   :  { %p153_p6 = por %p152_p5, %p151_p4 }
   0xd   :  { %p154_p7 = pnand %p153_p6, %p147_p3 }
   0xf   :  { %157 = shalt.err (!%p154_p7)
}
  0x10   :  { %21 = dma.hbm_to_vmem [thread:$0]  %s244_s1, 128, %s19_s13, [#allocation3]  }
  0x11   :  { %180 = dma.done.wait [#allocation3], 128  }
  0x12   :  { %181 = vsyncadd [#allocation3], 4294967168  ;;  %v185_v0 = vmov 0   ;;  %vm41_vm0 = vcmask 261120   ;;  %v40_v1 = vld [vmem:[%s243_s0] sm:$0xff]  ;;  %v34_v12 = vlaneseq  ;;  %vm60_vm2 = vcmask 7168  }
  0x13   :  { %126 = vset.pattern.permute.xlu1 %v185_v0  ;;  %127 = vset.pattern.permute.xlu0 %v185_v0  ;;  %v72_v2 = vld [vmem:[#allocation2] sm:$0xff]  ;;  %v42_v4 = vsel %vm41_vm0, %v40_v1, -inf  ;;  %s186_s1 = smov [#allocation5]  }
  0x14   :  { %v33_v3 = vld [vmem:[%s245_s2] sm:$0xff]  ;;  %43 = vmax.xlane.f32.xlu0 %v42_v4  ;;  %v73_v5 = vsel %vm41_vm0, %v72_v2, -inf  ;;  %v35_v13 = vand.u32 127, %v34_v12  ;;  %s110_s2 = sshll.u32 %s186_s1, 4  ;;  %s111_s2 = int_to_ptr.vmem [resolvable:$true] %s110_s2 }
  0x15   :  { %37 = vperm.xlu1 %126, %v33_v3   ;;  %s158_s30 = scalar_lea.vmem %s111_s2, 128  ;;  %p163_p9 = scmp.lt.s32.totalorder %s111_s2, %s111_s2 }
  0x16   :  { %p159_p8 = scmp.ne.s32.totalorder %s111_s2, %s158_s30  ;;  %p164_p10 = scmp.lt.s32.totalorder %s158_s30, %s158_s30 }
  0x18   :  { %74 = vmax.xlane.f32.xlu0 %v73_v5  ;;  %p165_p11 = por %p164_p10, %p163_p9 }
  0x1a   :  { %p166_p12 = pnand %p165_p11, %p159_p8 }
  0x94   :  { %v38_v14 = vpop.permute.xlu1 %37 }
  0x95   :  { %vm39_vm1 = vcmp.eq.s32.totalorder %v35_v13, %v38_v14 }
  0x96   :  { %v54_v18 = vsel %vm39_vm1, %v40_v1, 0.0  ;;  %v85_v21 = vsel %vm39_vm1, %v72_v2, 0.0 }
  0x97   :  { %v55_v20 = vsel %vm41_vm0, %v54_v18, 0.0  ;;  %v86_v22 = vsel %vm41_vm0, %v85_v21, 0.0 }
  0xa1   :  { %v44_v6 = vpop.xlane.xlu0 %43 }
  0xa2   :  { %v45_v7 = vsub.f32 %v40_v1, %v44_v6 }
  0xa4   :  { %v46_v8 = vmul.f32 1.442695, %v45_v7 }
  0xa5   :  { %v75_v9 = vpop.xlane.xlu0 %74 }
  0xa6   :  { %128 = vpow2.f32 %v46_v8  ;;  %v76_v10 = vsub.f32 %v72_v2, %v75_v9 }
  0xa8   :  { %v77_v11 = vmul.f32 1.442695, %v76_v10 }
  0xaa   :  { %130 = vpow2.f32 %v77_v11 }
  0xb0   :  { %v129_v15 = vpop.eup %128 }
  0xb1   :  { %v48_v16 = vsel %vm41_vm0, %v129_v15, 0.0 }
  0xb2   :  { %49 = vadd.xlane.f32.xlu1 %v48_v16 }
  0xb4   :  { %v131_v17 = vpop.eup %130 }
  0xb5   :  { %v79_v19 = vsel %vm41_vm0, %v131_v17, 0.0 }
  0xb6   :  { %80 = vadd.xlane.f32.xlu0 %v79_v19 }
  0xba   :  { %56 = vadd.xlane.f32.xlu0 %v55_v20 }
  0xbe   :  { %87 = vadd.xlane.f32.xlu0 %v86_v22 }
 0x13f   :  { %v50_v23 = vpop.xlane.xlu1 %49 }
 0x140   :  { %132 = vlog2.f32 %v50_v23 }
 0x143   :  { %v81_v24 = vpop.xlane.xlu0 %80 }
 0x144   :  { %134 = vlog2.f32 %v81_v24 }
 0x147   :  { %v57_v27 = vpop.xlane.xlu0 %56 }
 0x14a   :  { %v133_v25 = vpop.eup %132 }
 0x14b   :  { %v52_v26 = vmul.f32 0.6931472, %v133_v25  ;;  %v88_v34 = vpop.xlane.xlu0 %87 }
 0x14d   :  { %v53_v28 = vadd.f32 %v52_v26, %v44_v6 }
 0x14e   :  { %v135_v29 = vpop.eup %134 }
 0x14f   :  { %v83_v30 = vmul.f32 0.6931472, %v135_v29  ;;  %v58_v31 = vsub.f32 %v53_v28, %v57_v27 }
 0x151   :  { %v84_v32 = vadd.f32 %v83_v30, %v75_v9  ;;  %v61_v33 = vsel %vm60_vm2, %v58_v31, 0.0 }
 0x152   :  { %62 = vadd.xlane.f32.xlu0 %v61_v33 }
 0x153   :  { %v89_v35 = vsub.f32 %v84_v32, %v88_v34 }
 0x155   :  { %v91_v36 = vsel %vm60_vm2, %v89_v35, 0.0 }
 0x156   :  { %92 = vadd.xlane.f32.xlu0 %v91_v36 }
 0x1df   :  { %v63_v37 = vpop.xlane.xlu0 %62 }
 0x1e0   :  { %v64_v38 = vrot.slane %v63_v37, 4 }
 0x1e2   :  { %v65_v39 = vadd.f32 %v64_v38, %v63_v37 }
 0x1e3   :  { %v93_v40 = vpop.xlane.xlu0 %92 }
 0x1e4   :  { %v66_v41 = vrot.slane %v65_v39, 2  ;;  %v94_v42 = vrot.slane %v93_v40, 4 }
 0x1e6   :  { %v95_v43 = vadd.f32 %v94_v42, %v93_v40  ;;  %v67_v44 = vadd.f32 %v66_v41, %v65_v39 }
 0x1e8   :  { %v96_v45 = vrot.slane %v95_v43, 2  ;;  %v68_v46 = vrot.slane %v67_v44, 1 }
 0x1ea   :  { %v97_v47 = vadd.f32 %v96_v45, %v95_v43  ;;  %v69_v48 = vadd.f32 %v68_v46, %v67_v44 }
 0x1ec   :  { %119 = vpush %v69_v48  ;;  %v98_v49 = vrot.slane %v97_v47, 1 }
 0x1ee   :  { %v99_v50 = vadd.f32 %v98_v49, %v97_v47 }
 0x1f0   :  { %121 = vpush %v99_v50 }
 0x21d   :  { %s120_s0 = spop %119 }
 0x221   :  { %s122_s28 = spop %121 }
 0x222   :  { %s101_s29 = sadd.f32 %s122_s28, %s120_s0 }
 0x224   :  { %v102_v51 = vstv %s101_s29 }
 0x225   :  { %103 = vst [vmem:[#allocation5] sm:$0xff] %v102_v51 }
 0x226   :  { %169 = shalt.err (!%p166_p12)
}
 0x227   :  { %s170_s6 = scalar_lea.hbm %s246_s3, 128 }
 0x228   :  { %p171_p13 = scmp.ne.s32.totalorder %s246_s3, %s170_s6  ;;  %p174_p0 = scmp.lt.u32.totalorder %s170_s6, %s246_s3 }
 0x22a   :  { %p176_p1 = pnand %p174_p0, %p171_p13 }
 0x22c   :  { %179 = shalt.err (!%p176_p1)
}
 0x22d   :  { %113 = dma.vmem_to_hbm [thread:$0]  %s111_s2, 128, %s246_s3, [#allocation4]  }
 0x22e   :  { %182 = dma.done.wait [#allocation4], 128  }
 0x22f   :  { %183 = vsyncadd [#allocation4], 4294967168 }
 0x230   :  { %117 = vsyncpa [#allocation3], 1 }
 0x231   :  { %118 = vsyncpa [#allocation4], 1 }

</bundles_post_ra>
